<compile_context>
chip_gen: v7x
topology: tpu7x:2x2x1
jax: 0.10.0
libtpu: 0.0.40
codegen_flags: <defaults>
</compile_context>

<pallas_src>
import functools

import jax
import jax.numpy as jnp
from jax.experimental import pallas as pl
from jax.experimental.pallas import tpu as pltpu  # noqa: F401  (kept for TPU-specific tuning hooks)

BN_EPS = 1e-5
LANE = 128


def _round_up(v, m):
    return (v + m - 1) // m * m


def _bn_relu(h, gamma, beta):
    """Training-mode BatchNorm1d (batch stats, biased variance) + ReLU.

    Centered variance (mean((h-m)^2)) for numerical stability; fused to one
    per-column scale/shift.  All statistics in f32.
    """
    mean = jnp.mean(h, axis=0, keepdims=True)
    var = jnp.mean((h - mean) * (h - mean), axis=0, keepdims=True)
    scale = gamma * jax.lax.rsqrt(var + BN_EPS)
    shift = beta - mean * scale
    return jnp.maximum(h * scale + shift, 0.0)


def _ensemble_kernel(x_ref, w0_ref, w1_ref, w2_ref, p_ref, o_ref, *, e, h1, h2, c_pad):
    # Single invocation: every ref is the whole array, resident in VMEM.
    x = x_ref[...].astype(jnp.bfloat16)          # (N, in_c)        bf16
    w0 = w0_ref[...]                             # (in_c, E*h1)     bf16 (members fused on cols)

    # Packed per-feature params: [g0_all | be0_all | g1_all | be1_all | b2_all]
    # with all region / member offsets multiples of 128 lanes.
    off_be0 = e * h1
    off_g1 = 2 * e * h1
    off_be1 = off_g1 + e * h2
    off_b2 = off_be1 + e * h2

    g0_all = p_ref[:, 0:off_be0]                 # (1, E*h1)
    be0_all = p_ref[:, off_be0:off_g1]           # (1, E*h1)

    # fc0 for all members in one MXU stream, then one wide column-wise BN0+ReLU
    # (exact: BN statistics are per-column).  fc0/fc1 biases omitted -- they
    # cancel under training-mode BN mean subtraction.
    h0 = jnp.dot(x, w0, preferred_element_type=jnp.float32)   # (N, E*h1) f32
    h0 = _bn_relu(h0, g0_all, be0_all)

    # fc1 -> bn1 -> relu -> fc, unrolled per member; per-member output written
    # to a lane-aligned 128-wide slice of the (N, E*C_pad) output slab.
    for m in range(e):
        hm = h0[:, m * h1:(m + 1) * h1].astype(jnp.bfloat16)   # (N, h1)
        hb = jnp.dot(hm, w1_ref[m], preferred_element_type=jnp.float32)  # (N, h2)

        g1m = p_ref[:, off_g1 + m * h2: off_g1 + (m + 1) * h2]
        be1m = p_ref[:, off_be1 + m * h2: off_be1 + (m + 1) * h2]
        hb = _bn_relu(hb, g1m, be1m)

        b2m = p_ref[:, off_b2 + m * c_pad: off_b2 + (m + 1) * c_pad]
        outm = jnp.dot(hb.astype(jnp.bfloat16), w2_ref[m],
                       preferred_element_type=jnp.float32) + b2m          # (N, c_pad)
        o_ref[:, m * c_pad:(m + 1) * c_pad] = outm.astype(o_ref.dtype)


def mlp_ensemble_head(x, params, out_channels):
    """x: (N, in_channels) f32.  Returns (N, E, out_channels) f32
    (== torch.stack([head(x) for head in ensemble], dim=1), training-mode BN)."""
    n, in_c = x.shape
    w0, w1, w2, packed = params["w0"], params["w1"], params["w2"], params["packed"]
    e, h1, h2 = w1.shape
    c_pad = w2.shape[2]
    assert w0.shape == (in_c, e * h1)

    kernel = functools.partial(_ensemble_kernel, e=e, h1=h1, h2=h2, c_pad=c_pad)

    flops = 2 * n * (in_c * e * h1 + e * (h1 * h2 + h2 * c_pad))
    bytes_accessed = (x.size * 4 + w0.size * 2 + w1.size * 2 + w2.size * 2
                      + packed.size * 4 + n * e * c_pad * 4)

    out = pl.pallas_call(
        kernel,
        out_shape=jax.ShapeDtypeStruct((n, e * c_pad), jnp.float32),
        cost_estimate=pl.CostEstimate(
            flops=flops,
            transcendentals=e * (h1 + h2),
            bytes_accessed=bytes_accessed,
        ),
    )(x, w0, w1, w2, packed)

    # Lane-concatenated (N, E*C_pad) slab -> (N, E, C_pad) is a free reshape of
    # a contiguous buffer; then slice to the real out_channels.
    return out.reshape(n, e, c_pad)[:, :, :out_channels]


def init_raw_params(key, in_channels, out_channels, h1=256, h2=128, n_models=3):
    """Per-head parameters with nn.Linear / nn.BatchNorm1d shapes (f32).
    Linear weights stored transposed: (in_features, out_features)."""
    heads = []
    for k in jax.random.split(key, n_models):
        ks = jax.random.split(k, 7)

        def lin(kk, fi, fo):
            bound = 1.0 / jnp.sqrt(fi)
            kw, kb = jax.random.split(kk)
            w = jax.random.uniform(kw, (fi, fo), jnp.float32, -bound, bound)
            b = jax.random.uniform(kb, (1, fo), jnp.float32, -bound, bound)
            return w, b

        w0, b0 = lin(ks[0], in_channels, h1)
        w1, b1 = lin(ks[1], h1, h2)
        w2, b2 = lin(ks[2], h2, out_channels)
        g0 = 1.0 + 0.1 * jax.random.normal(ks[3], (1, h1), jnp.float32)
        be0 = 0.1 * jax.random.normal(ks[4], (1, h1), jnp.float32)
        g1 = 1.0 + 0.1 * jax.random.normal(ks[5], (1, h2), jnp.float32)
        be1 = 0.1 * jax.random.normal(ks[6], (1, h2), jnp.float32)
        heads.append(dict(w0=w0, b0=b0, g0=g0, be0=be0,
                          w1=w1, b1=b1, g1=g1, be1=be1,
                          w2=w2, b2=b2))
    return heads


def pack_params(heads, in_channels):
    """Kernel-side layout:
      w0     : (in_c, E*h1)      bf16   -- members fused along output columns
      w1     : (E, h1, h2)       bf16
      w2     : (E, h2, C_pad)    bf16   -- final columns lane-padded to 128
      packed : (1, 2*E*h1 + 2*E*h2 + E*C_pad) f32 = [g0|be0|g1|be1|b2] (all members)
    fc0/fc1 biases are dropped (cancelled by training-mode BN)."""
    e = len(heads)
    h1 = heads[0]["w0"].shape[1]
    h2 = heads[0]["w1"].shape[1]
    out_c = heads[0]["w2"].shape[1]
    c_pad = _round_up(out_c, LANE)

    w0_fused = jnp.concatenate([p["w0"] for p in heads], axis=-1).astype(jnp.bfloat16)
    w1 = jnp.stack([p["w1"].astype(jnp.bfloat16) for p in heads])
    w2 = jnp.stack([
        jnp.pad(p["w2"], ((0, 0), (0, c_pad - out_c))).astype(jnp.bfloat16)
        for p in heads
    ])
    packed = jnp.concatenate(
        [p["g0"] for p in heads]
        + [p["be0"] for p in heads]
        + [p["g1"] for p in heads]
        + [p["be1"] for p in heads]
        + [jnp.pad(p["b2"], ((0, 0), (0, c_pad - out_c))) for p in heads],
        axis=-1)
    assert packed.shape == (1, 2 * e * h1 + 2 * e * h2 + e * c_pad)
    return dict(w0=w0_fused, w1=w1, w2=w2, packed=packed)


def mlp_ensemble_ref(x, heads):
    """Pure-JAX f32 reference of the PyTorch forward (training-mode BN),
    including the fc0/fc1 biases (which BN cancels)."""
    def bn_relu(h, g, be):
        m = jnp.mean(h, axis=0, keepdims=True)
        v = jnp.mean((h - m) ** 2, axis=0, keepdims=True)
        return jnp.maximum((h - m) / jnp.sqrt(v + BN_EPS) * g + be, 0.0)

    outs = []
    for p in heads:
        h = bn_relu(x @ p["w0"] + p["b0"], p["g0"], p["be0"])
        h = bn_relu(h @ p["w1"] + p["b1"], p["g1"], p["be1"])
        outs.append(h @ p["w2"] + p["b2"])
    return jnp.stack(outs, axis=1)   # (N, E, out_channels)


if __name__ == "__main__":
    key = jax.random.PRNGKey(0)
    k_x, k_p = jax.random.split(key)

    N, IN_C, OUT_C, E = 8, 32, 10, 3
    x = jax.random.normal(k_x, (N, IN_C), jnp.float32)

    heads = init_raw_params(k_p, IN_C, OUT_C, h1=256, h2=128, n_models=E)
    params = pack_params(heads, IN_C)

    out = mlp_ensemble_head(x, params, OUT_C)
    out = jax.block_until_ready(out)

    ref = mlp_ensemble_ref(x, heads)
    assert out.shape == (N, E, OUT_C), out.shape
    # bf16 MXU operands vs f32 reference (BN stats kept in f32) -> loosened tolerance.
    max_err = float(jnp.max(jnp.abs(out - ref)))
    assert jnp.allclose(out, ref, atol=7.5e-2, rtol=5e-2), f"mismatch, max_err={max_err}"

    print("KERNEL_OK")
</pallas_src>

<mosaic_0001>
module attributes {stable_mosaic.version = 11 : i64} {
  func.func @_ensemble_kernel(%arg0: memref<8x32xf32, #tpu.memory_space<vmem>>, %arg1: memref<32x768xbf16, #tpu.memory_space<vmem>>, %arg2: memref<3x256x128xbf16, #tpu.memory_space<vmem>>, %arg3: memref<3x128x128xbf16, #tpu.memory_space<vmem>>, %arg4: memref<1x2688xf32, #tpu.memory_space<vmem>>, %arg5: memref<8x384xf32, #tpu.memory_space<vmem>>) attributes {dimension_semantics = [], scalar_prefetch = 0 : i64, scratch_operands = 0 : i64, tpu.core_type = #tpu.core_type<tc>} {
    %c0 = arith.constant 0 : index
    %c0_0 = arith.constant 0 : index
    %0 = vector.load %arg0[%c0, %c0_0] : memref<8x32xf32, #tpu.memory_space<vmem>>, vector<8x32xf32>
    %1 = arith.truncf %0 : vector<8x32xf32> to vector<8x32xbf16>
    %c0_1 = arith.constant 0 : index
    %c0_2 = arith.constant 0 : index
    %2 = vector.load %arg1[%c0_1, %c0_2] : memref<32x768xbf16, #tpu.memory_space<vmem>>, vector<32x768xbf16>
    %c0_3 = arith.constant 0 : index
    %c0_4 = arith.constant 0 : index
    %3 = vector.load %arg4[%c0_3, %c0_4] : memref<1x2688xf32, #tpu.memory_space<vmem>>, vector<1x768xf32>
    %c0_5 = arith.constant 0 : index
    %c768 = arith.constant 768 : index
    %4 = vector.load %arg4[%c0_5, %c768] : memref<1x2688xf32, #tpu.memory_space<vmem>>, vector<1x768xf32>
    %cst = arith.constant dense<0.000000e+00> : vector<8x768xf32>
    %5 = tpu.matmul %1, %2, %cst {dimension_numbers = #tpu.dot_dimension_numbers<[1], [0], [0], [1], [0, 0, 1, 1], [], []>} : vector<8x32xbf16>, vector<32x768xbf16>, vector<8x768xf32> -> vector<8x768xf32>
    %cst_6 = arith.constant dense<0.000000e+00> : vector<768xf32>
    %6 = vector.multi_reduction <add>, %5, %cst_6 [0] : vector<8x768xf32> to vector<768xf32>
    %7 = vector.shape_cast %6 : vector<768xf32> to vector<1x768xf32>
    %cst_7 = arith.constant 8.000000e+00 : f32
    %8 = vector.broadcast %cst_7 : f32 to vector<1x768xf32>
    %9 = arith.divf %7, %8 : vector<1x768xf32>
    %10 = vector.broadcast %9 : vector<1x768xf32> to vector<8x768xf32>
    %11 = arith.subf %5, %10 : vector<8x768xf32>
    %12 = vector.broadcast %9 : vector<1x768xf32> to vector<8x768xf32>
    %13 = arith.subf %5, %12 : vector<8x768xf32>
    %14 = arith.mulf %11, %13 : vector<8x768xf32>
    %cst_8 = arith.constant dense<0.000000e+00> : vector<768xf32>
    %15 = vector.multi_reduction <add>, %14, %cst_8 [0] : vector<8x768xf32> to vector<768xf32>
    %16 = vector.shape_cast %15 : vector<768xf32> to vector<1x768xf32>
    %cst_9 = arith.constant 8.000000e+00 : f32
    %17 = vector.broadcast %cst_9 : f32 to vector<1x768xf32>
    %18 = arith.divf %16, %17 : vector<1x768xf32>
    %cst_10 = arith.constant 9.99999974E-6 : f32
    %19 = vector.broadcast %cst_10 : f32 to vector<1x768xf32>
    %20 = arith.addf %18, %19 : vector<1x768xf32>
    %21 = math.rsqrt %20 : vector<1x768xf32>
    %22 = arith.mulf %3, %21 : vector<1x768xf32>
    %23 = arith.mulf %9, %22 : vector<1x768xf32>
    %24 = arith.subf %4, %23 : vector<1x768xf32>
    %25 = vector.broadcast %22 : vector<1x768xf32> to vector<8x768xf32>
    %26 = arith.mulf %5, %25 : vector<8x768xf32>
    %27 = vector.broadcast %24 : vector<1x768xf32> to vector<8x768xf32>
    %28 = arith.addf %26, %27 : vector<8x768xf32>
    %cst_11 = arith.constant 0.000000e+00 : f32
    %29 = vector.broadcast %cst_11 : f32 to vector<8x768xf32>
    %30 = arith.maximumf %28, %29 : vector<8x768xf32>
    %31 = vector.extract_strided_slice %30 {offsets = [0, 0], sizes = [8, 256], strides = [1, 1]} : vector<8x768xf32> to vector<8x256xf32>
    %32 = arith.truncf %31 : vector<8x256xf32> to vector<8x256xbf16>
    %c0_12 = arith.constant 0 : index
    %c0_13 = arith.constant 0 : index
    %c0_14 = arith.constant 0 : index
    %33 = vector.load %arg2[%c0_12, %c0_13, %c0_14] : memref<3x256x128xbf16, #tpu.memory_space<vmem>>, vector<1x256x128xbf16>
    %34 = vector.shape_cast %33 : vector<1x256x128xbf16> to vector<256x128xbf16>
    %cst_15 = arith.constant dense<0.000000e+00> : vector<8x128xf32>
    %35 = tpu.matmul %32, %34, %cst_15 {dimension_numbers = #tpu.dot_dimension_numbers<[1], [0], [0], [1], [0, 0, 1, 1], [], []>} : vector<8x256xbf16>, vector<256x128xbf16>, vector<8x128xf32> -> vector<8x128xf32>
    %c0_16 = arith.constant 0 : index
    %c1536 = arith.constant 1536 : index
    %36 = vector.load %arg4[%c0_16, %c1536] : memref<1x2688xf32, #tpu.memory_space<vmem>>, vector<1x128xf32>
    %c0_17 = arith.constant 0 : index
    %c1920 = arith.constant 1920 : index
    %37 = vector.load %arg4[%c0_17, %c1920] : memref<1x2688xf32, #tpu.memory_space<vmem>>, vector<1x128xf32>
    %cst_18 = arith.constant dense<0.000000e+00> : vector<128xf32>
    %38 = vector.multi_reduction <add>, %35, %cst_18 [0] : vector<8x128xf32> to vector<128xf32>
    %39 = vector.shape_cast %38 : vector<128xf32> to vector<1x128xf32>
    %cst_19 = arith.constant 8.000000e+00 : f32
    %40 = vector.broadcast %cst_19 : f32 to vector<1x128xf32>
    %41 = arith.divf %39, %40 : vector<1x128xf32>
    %42 = vector.broadcast %41 : vector<1x128xf32> to vector<8x128xf32>
    %43 = arith.subf %35, %42 : vector<8x128xf32>
    %44 = vector.broadcast %41 : vector<1x128xf32> to vector<8x128xf32>
    %45 = arith.subf %35, %44 : vector<8x128xf32>
    %46 = arith.mulf %43, %45 : vector<8x128xf32>
    %cst_20 = arith.constant dense<0.000000e+00> : vector<128xf32>
    %47 = vector.multi_reduction <add>, %46, %cst_20 [0] : vector<8x128xf32> to vector<128xf32>
    %48 = vector.shape_cast %47 : vector<128xf32> to vector<1x128xf32>
    %cst_21 = arith.constant 8.000000e+00 : f32
    %49 = vector.broadcast %cst_21 : f32 to vector<1x128xf32>
    %50 = arith.divf %48, %49 : vector<1x128xf32>
    %cst_22 = arith.constant 9.99999974E-6 : f32
    %51 = vector.broadcast %cst_22 : f32 to vector<1x128xf32>
    %52 = arith.addf %50, %51 : vector<1x128xf32>
    %53 = math.rsqrt %52 : vector<1x128xf32>
    %54 = arith.mulf %36, %53 : vector<1x128xf32>
    %55 = arith.mulf %41, %54 : vector<1x128xf32>
    %56 = arith.subf %37, %55 : vector<1x128xf32>
    %57 = vector.broadcast %54 : vector<1x128xf32> to vector<8x128xf32>
    %58 = arith.mulf %35, %57 : vector<8x128xf32>
    %59 = vector.broadcast %56 : vector<1x128xf32> to vector<8x128xf32>
    %60 = arith.addf %58, %59 : vector<8x128xf32>
    %cst_23 = arith.constant 0.000000e+00 : f32
    %61 = vector.broadcast %cst_23 : f32 to vector<8x128xf32>
    %62 = arith.maximumf %60, %61 : vector<8x128xf32>
    %c0_24 = arith.constant 0 : index
    %c2304 = arith.constant 2304 : index
    %63 = vector.load %arg4[%c0_24, %c2304] : memref<1x2688xf32, #tpu.memory_space<vmem>>, vector<1x128xf32>
    %64 = arith.truncf %62 : vector<8x128xf32> to vector<8x128xbf16>
    %c0_25 = arith.constant 0 : index
    %c0_26 = arith.constant 0 : index
    %c0_27 = arith.constant 0 : index
    %65 = vector.load %arg3[%c0_25, %c0_26, %c0_27] : memref<3x128x128xbf16, #tpu.memory_space<vmem>>, vector<1x128x128xbf16>
    %66 = vector.shape_cast %65 : vector<1x128x128xbf16> to vector<128x128xbf16>
    %cst_28 = arith.constant dense<0.000000e+00> : vector<8x128xf32>
    %67 = tpu.matmul %64, %66, %cst_28 {dimension_numbers = #tpu.dot_dimension_numbers<[1], [0], [0], [1], [0, 0, 1, 1], [], []>} : vector<8x128xbf16>, vector<128x128xbf16>, vector<8x128xf32> -> vector<8x128xf32>
    %68 = vector.broadcast %63 : vector<1x128xf32> to vector<8x128xf32>
    %69 = arith.addf %67, %68 : vector<8x128xf32>
    %c0_29 = arith.constant 0 : index
    %c0_30 = arith.constant 0 : index
    %70 = vector.load %arg5[%c0_29, %c0_30] : memref<8x384xf32, #tpu.memory_space<vmem>>, vector<8x128xf32>
    tpu.vector_store %arg5[%c0_29, %c0_30], %69 {strides = array<i32>} : memref<8x384xf32, #tpu.memory_space<vmem>>, vector<8x128xf32>,
    %71 = vector.extract_strided_slice %30 {offsets = [0, 256], sizes = [8, 256], strides = [1, 1]} : vector<8x768xf32> to vector<8x256xf32>
    %72 = arith.truncf %71 : vector<8x256xf32> to vector<8x256xbf16>
    %c1 = arith.constant 1 : index
    %c0_31 = arith.constant 0 : index
    %c0_32 = arith.constant 0 : index
    %73 = vector.load %arg2[%c1, %c0_31, %c0_32] : memref<3x256x128xbf16, #tpu.memory_space<vmem>>, vector<1x256x128xbf16>
    %74 = vector.shape_cast %73 : vector<1x256x128xbf16> to vector<256x128xbf16>
    %cst_33 = arith.constant dense<0.000000e+00> : vector<8x128xf32>
    %75 = tpu.matmul %72, %74, %cst_33 {dimension_numbers = #tpu.dot_dimension_numbers<[1], [0], [0], [1], [0, 0, 1, 1], [], []>} : vector<8x256xbf16>, vector<256x128xbf16>, vector<8x128xf32> -> vector<8x128xf32>
    %c0_34 = arith.constant 0 : index
    %c1664 = arith.constant 1664 : index
    %76 = vector.load %arg4[%c0_34, %c1664] : memref<1x2688xf32, #tpu.memory_space<vmem>>, vector<1x128xf32>
    %c0_35 = arith.constant 0 : index
    %c2048 = arith.constant 2048 : index
    %77 = vector.load %arg4[%c0_35, %c2048] : memref<1x2688xf32, #tpu.memory_space<vmem>>, vector<1x128xf32>
    %cst_36 = arith.constant dense<0.000000e+00> : vector<128xf32>
    %78 = vector.multi_reduction <add>, %75, %cst_36 [0] : vector<8x128xf32> to vector<128xf32>
    %79 = vector.shape_cast %78 : vector<128xf32> to vector<1x128xf32>
    %cst_37 = arith.constant 8.000000e+00 : f32
    %80 = vector.broadcast %cst_37 : f32 to vector<1x128xf32>
    %81 = arith.divf %79, %80 : vector<1x128xf32>
    %82 = vector.broadcast %81 : vector<1x128xf32> to vector<8x128xf32>
    %83 = arith.subf %75, %82 : vector<8x128xf32>
    %84 = vector.broadcast %81 : vector<1x128xf32> to vector<8x128xf32>
    %85 = arith.subf %75, %84 : vector<8x128xf32>
    %86 = arith.mulf %83, %85 : vector<8x128xf32>
    %cst_38 = arith.constant dense<0.000000e+00> : vector<128xf32>
    %87 = vector.multi_reduction <add>, %86, %cst_38 [0] : vector<8x128xf32> to vector<128xf32>
    %88 = vector.shape_cast %87 : vector<128xf32> to vector<1x128xf32>
    %cst_39 = arith.constant 8.000000e+00 : f32
    %89 = vector.broadcast %cst_39 : f32 to vector<1x128xf32>
    %90 = arith.divf %88, %89 : vector<1x128xf32>
    %cst_40 = arith.constant 9.99999974E-6 : f32
    %91 = vector.broadcast %cst_40 : f32 to vector<1x128xf32>
    %92 = arith.addf %90, %91 : vector<1x128xf32>
    %93 = math.rsqrt %92 : vector<1x128xf32>
    %94 = arith.mulf %76, %93 : vector<1x128xf32>
    %95 = arith.mulf %81, %94 : vector<1x128xf32>
    %96 = arith.subf %77, %95 : vector<1x128xf32>
    %97 = vector.broadcast %94 : vector<1x128xf32> to vector<8x128xf32>
    %98 = arith.mulf %75, %97 : vector<8x128xf32>
    %99 = vector.broadcast %96 : vector<1x128xf32> to vector<8x128xf32>
    %100 = arith.addf %98, %99 : vector<8x128xf32>
    %cst_41 = arith.constant 0.000000e+00 : f32
    %101 = vector.broadcast %cst_41 : f32 to vector<8x128xf32>
    %102 = arith.maximumf %100, %101 : vector<8x128xf32>
    %c0_42 = arith.constant 0 : index
    %c2432 = arith.constant 2432 : index
    %103 = vector.load %arg4[%c0_42, %c2432] : memref<1x2688xf32, #tpu.memory_space<vmem>>, vector<1x128xf32>
    %104 = arith.truncf %102 : vector<8x128xf32> to vector<8x128xbf16>
    %c1_43 = arith.constant 1 : index
    %c0_44 = arith.constant 0 : index
    %c0_45 = arith.constant 0 : index
    %105 = vector.load %arg3[%c1_43, %c0_44, %c0_45] : memref<3x128x128xbf16, #tpu.memory_space<vmem>>, vector<1x128x128xbf16>
    %106 = vector.shape_cast %105 : vector<1x128x128xbf16> to vector<128x128xbf16>
    %cst_46 = arith.constant dense<0.000000e+00> : vector<8x128xf32>
    %107 = tpu.matmul %104, %106, %cst_46 {dimension_numbers = #tpu.dot_dimension_numbers<[1], [0], [0], [1], [0, 0, 1, 1], [], []>} : vector<8x128xbf16>, vector<128x128xbf16>, vector<8x128xf32> -> vector<8x128xf32>
    %108 = vector.broadcast %103 : vector<1x128xf32> to vector<8x128xf32>
    %109 = arith.addf %107, %108 : vector<8x128xf32>
    %c0_47 = arith.constant 0 : index
    %c128 = arith.constant 128 : index
    %110 = vector.load %arg5[%c0_47, %c128] : memref<8x384xf32, #tpu.memory_space<vmem>>, vector<8x128xf32>
    tpu.vector_store %arg5[%c0_47, %c128], %109 {strides = array<i32>} : memref<8x384xf32, #tpu.memory_space<vmem>>, vector<8x128xf32>,
    %111 = vector.extract_strided_slice %30 {offsets = [0, 512], sizes = [8, 256], strides = [1, 1]} : vector<8x768xf32> to vector<8x256xf32>
    %112 = arith.truncf %111 : vector<8x256xf32> to vector<8x256xbf16>
    %c2 = arith.constant 2 : index
    %c0_48 = arith.constant 0 : index
    %c0_49 = arith.constant 0 : index
    %113 = vector.load %arg2[%c2, %c0_48, %c0_49] : memref<3x256x128xbf16, #tpu.memory_space<vmem>>, vector<1x256x128xbf16>
    %114 = vector.shape_cast %113 : vector<1x256x128xbf16> to vector<256x128xbf16>
    %cst_50 = arith.constant dense<0.000000e+00> : vector<8x128xf32>
    %115 = tpu.matmul %112, %114, %cst_50 {dimension_numbers = #tpu.dot_dimension_numbers<[1], [0], [0], [1], [0, 0, 1, 1], [], []>} : vector<8x256xbf16>, vector<256x128xbf16>, vector<8x128xf32> -> vector<8x128xf32>
    %c0_51 = arith.constant 0 : index
    %c1792 = arith.constant 1792 : index
    %116 = vector.load %arg4[%c0_51, %c1792] : memref<1x2688xf32, #tpu.memory_space<vmem>>, vector<1x128xf32>
    %c0_52 = arith.constant 0 : index
    %c2176 = arith.constant 2176 : index
    %117 = vector.load %arg4[%c0_52, %c2176] : memref<1x2688xf32, #tpu.memory_space<vmem>>, vector<1x128xf32>
    %cst_53 = arith.constant dense<0.000000e+00> : vector<128xf32>
    %118 = vector.multi_reduction <add>, %115, %cst_53 [0] : vector<8x128xf32> to vector<128xf32>
    %119 = vector.shape_cast %118 : vector<128xf32> to vector<1x128xf32>
    %cst_54 = arith.constant 8.000000e+00 : f32
    %120 = vector.broadcast %cst_54 : f32 to vector<1x128xf32>
    %121 = arith.divf %119, %120 : vector<1x128xf32>
    %122 = vector.broadcast %121 : vector<1x128xf32> to vector<8x128xf32>
    %123 = arith.subf %115, %122 : vector<8x128xf32>
    %124 = vector.broadcast %121 : vector<1x128xf32> to vector<8x128xf32>
    %125 = arith.subf %115, %124 : vector<8x128xf32>
    %126 = arith.mulf %123, %125 : vector<8x128xf32>
    %cst_55 = arith.constant dense<0.000000e+00> : vector<128xf32>
    %127 = vector.multi_reduction <add>, %126, %cst_55 [0] : vector<8x128xf32> to vector<128xf32>
    %128 = vector.shape_cast %127 : vector<128xf32> to vector<1x128xf32>
    %cst_56 = arith.constant 8.000000e+00 : f32
    %129 = vector.broadcast %cst_56 : f32 to vector<1x128xf32>
    %130 = arith.divf %128, %129 : vector<1x128xf32>
    %cst_57 = arith.constant 9.99999974E-6 : f32
    %131 = vector.broadcast %cst_57 : f32 to vector<1x128xf32>
    %132 = arith.addf %130, %131 : vector<1x128xf32>
    %133 = math.rsqrt %132 : vector<1x128xf32>
    %134 = arith.mulf %116, %133 : vector<1x128xf32>
    %135 = arith.mulf %121, %134 : vector<1x128xf32>
    %136 = arith.subf %117, %135 : vector<1x128xf32>
    %137 = vector.broadcast %134 : vector<1x128xf32> to vector<8x128xf32>
    %138 = arith.mulf %115, %137 : vector<8x128xf32>
    %139 = vector.broadcast %136 : vector<1x128xf32> to vector<8x128xf32>
    %140 = arith.addf %138, %139 : vector<8x128xf32>
    %cst_58 = arith.constant 0.000000e+00 : f32
    %141 = vector.broadcast %cst_58 : f32 to vector<8x128xf32>
    %142 = arith.maximumf %140, %141 : vector<8x128xf32>
    %c0_59 = arith.constant 0 : index
    %c2560 = arith.constant 2560 : index
    %143 = vector.load %arg4[%c0_59, %c2560] : memref<1x2688xf32, #tpu.memory_space<vmem>>, vector<1x128xf32>
    %144 = arith.truncf %142 : vector<8x128xf32> to vector<8x128xbf16>
    %c2_60 = arith.constant 2 : index
    %c0_61 = arith.constant 0 : index
    %c0_62 = arith.constant 0 : index
    %145 = vector.load %arg3[%c2_60, %c0_61, %c0_62] : memref<3x128x128xbf16, #tpu.memory_space<vmem>>, vector<1x128x128xbf16>
    %146 = vector.shape_cast %145 : vector<1x128x128xbf16> to vector<128x128xbf16>
    %cst_63 = arith.constant dense<0.000000e+00> : vector<8x128xf32>
    %147 = tpu.matmul %144, %146, %cst_63 {dimension_numbers = #tpu.dot_dimension_numbers<[1], [0], [0], [1], [0, 0, 1, 1], [], []>} : vector<8x128xbf16>, vector<128x128xbf16>, vector<8x128xf32> -> vector<8x128xf32>
    %148 = vector.broadcast %143 : vector<1x128xf32> to vector<8x128xf32>
    %149 = arith.addf %147, %148 : vector<8x128xf32>
    %c0_64 = arith.constant 0 : index
    %c256 = arith.constant 256 : index
    %150 = vector.load %arg5[%c0_64, %c256] : memref<8x384xf32, #tpu.memory_space<vmem>>, vector<8x128xf32>
    tpu.vector_store %arg5[%c0_64, %c256], %149 {strides = array<i32>} : memref<8x384xf32, #tpu.memory_space<vmem>>, vector<8x128xf32>,
    return
  }
}

</mosaic_0001>

<bundles_post_ra>
// kernel: tpu_custom_call.1
= control target key start
LH: loop header
LB: loop body
LE: loop exit
PB: predicated region body
PF: predicated region fallthrough
CT: control target
= control target key end

     0   :  { %10 = vsyncpa [#allocation3], 0  ;;  %s2315_s0 = inlined_call_operand.hbm [shape: f32[8,32], index: 0, kind: input, shape index: {}]   ;;  %s2316_s1 = inlined_call_operand.hbm [shape: bf16[32,768], index: 1, kind: input, shape index: {}]   ;;  %s2317_s2 = inlined_call_operand.hbm [shape: bf16[3,256,128], index: 2, kind: input, shape index: {}]   ;;  %s2318_s3 = inlined_call_operand.hbm [shape: bf16[3,128,128], index: 3, kind: input, shape index: {}]   ;;  %s2319_s4 = inlined_call_operand.hbm [shape: f32[1,2688], index: 4, kind: input, shape index: {}]   ;;  %s2320_s5 = inlined_call_operand.hbm [shape: f32[8,384], index: 5, kind: output, shape index: {}]  }
   0x1   :  { %11 = vsyncpa [#allocation6], 0 }
   0x2   :  { %12 = vsyncpa [#allocation9], 0 }
   0x3   :  { %13 = vsyncpa [#allocation4], 0  ;;  %s2069_s18 = smov [#allocation5]   ;;  %s1929_s22 = scalar_lea.hbm %s2316_s1, 1536 }
   0x4   :  { %s29_s19 = sshll.u32 %s2069_s18, 4  ;;  %p1930_p0 = scmp.ne.s32.totalorder %s2316_s1, %s1929_s22  ;;  %s30_s19 = int_to_ptr.vmem [resolvable:$true] %s29_s19 }
   0x5   :  { %p1933_p1 = scmp.lt.u32.totalorder %s1929_s22, %s2316_s1 }
   0x7   :  { %p1935_p2 = pnand %p1933_p1, %p1930_p0 }
   0x9   :  { %1938 = shalt.err (!%p1935_p2)
}
   0xa   :  { %s1939_s27 = scalar_lea.vmem %s30_s19, 1536  ;;  %p1944_p4 = scmp.lt.s32.totalorder %s30_s19, %s30_s19 }
   0xb   :  { %p1940_p3 = scmp.ne.s32.totalorder %s30_s19, %s1939_s27  ;;  %p1945_p5 = scmp.lt.s32.totalorder %s1939_s27, %s1939_s27 }
   0xd   :  { %p1946_p6 = por %p1945_p5, %p1944_p4 }
   0xf   :  { %p1947_p7 = pnand %p1946_p6, %p1940_p3 }
  0x11   :  { %1950 = shalt.err (!%p1947_p7)
}
  0x12   :  { %s2070_s28 = smov 384   ;;  %s2071_s29 = smov 24  }
  0x13   :  { %35 = dma.hbm_to_vmem [thread:$0]  %s2316_s1, 1536, %s30_s19, [#allocation6], %s2070_s28, %s2070_s28, %s2071_s29  }
  0x14   :  { %s2072_s7 = smov [#allocation8]   ;;  %s2073_s9 = smov [#allocation2]  }
  0x15   :  { %s53_s8 = sshll.u32 %s2072_s7, 4  ;;  %s20_s10 = sshll.u32 %s2073_s9, 4  ;;  %s54_s8 = int_to_ptr.vmem [resolvable:$true] %s53_s8  ;;  %s21_s10 = int_to_ptr.vmem [resolvable:$true] %s20_s10 }
  0x16   :  { %s1951_s13 = scalar_lea.hbm %s2318_s3, 3072 }
  0x17   :  { %p1952_p8 = scmp.ne.s32.totalorder %s2318_s3, %s1951_s13  ;;  %p1955_p9 = scmp.lt.u32.totalorder %s1951_s13, %s2318_s3 }
  0x19   :  { %p1957_p10 = pnand %p1955_p9, %p1952_p8 }
  0x1b   :  { %1960 = shalt.err (!%p1957_p10)
}
  0x1c   :  { %s1961_s1 = scalar_lea.vmem %s54_s8, 3072  ;;  %p1966_p12 = scmp.lt.s32.totalorder %s54_s8, %s54_s8 }
  0x1d   :  { %p1962_p11 = scmp.ne.s32.totalorder %s54_s8, %s1961_s1  ;;  %p1967_p13 = scmp.lt.s32.totalorder %s1961_s1, %s1961_s1 }
  0x1f   :  { %p1968_p0 = por %p1967_p13, %p1966_p12 }
  0x21   :  { %p1969_p1 = pnand %p1968_p0, %p1962_p11 }
  0x23   :  { %1972 = shalt.err (!%p1969_p1)
}
  0x24   :  { %s2074_s18 = smov 64   ;;  %s2075_s19 = smov 4  }
  0x25   :  { %59 = dma.hbm_to_vmem [thread:$0]  %s2318_s3, 3072, %s54_s8, [#allocation9], %s2074_s18, %s2074_s18, %s2075_s19  }
  0x26   :  { %s1973_s24 = scalar_lea.hbm %s2315_s0, 128 }
  0x27   :  { %p1974_p2 = scmp.ne.s32.totalorder %s2315_s0, %s1973_s24  ;;  %p1977_p3 = scmp.lt.u32.totalorder %s1973_s24, %s2315_s0 }
  0x29   :  { %p1979_p4 = pnand %p1977_p3, %p1974_p2 }
  0x2b   :  { %1982 = shalt.err (!%p1979_p4)
}
  0x2c   :  { %s1983_s29 = scalar_lea.vmem %s21_s10, 128  ;;  %p1988_p6 = scmp.lt.s32.totalorder %s21_s10, %s21_s10 }
  0x2d   :  { %p1984_p5 = scmp.ne.s32.totalorder %s21_s10, %s1983_s29  ;;  %p1989_p7 = scmp.lt.s32.totalorder %s1983_s29, %s1983_s29 }
  0x2f   :  { %p1990_p8 = por %p1989_p7, %p1988_p6 }
  0x31   :  { %p1991_p9 = pnand %p1990_p8, %p1984_p5 }
  0x33   :  { %1994 = shalt.err (!%p1991_p9)
}
  0x34   :  { %23 = dma.hbm_to_vmem [thread:$0]  %s2315_s0, 128, %s21_s10, [#allocation3]  }
  0x35   :  { %s2076_s6 = smov [#allocation7]   ;;  %s2077_s8 = smov [#allocation10]  }
  0x36   :  { %s41_s7 = sshll.u32 %s2076_s6, 4  ;;  %s66_s9 = sshll.u32 %s2077_s8, 4  ;;  %s42_s7 = int_to_ptr.vmem [resolvable:$true] %s41_s7  ;;  %s67_s9 = int_to_ptr.vmem [resolvable:$true] %s66_s9 }
  0x37   :  { %s1995_s13 = scalar_lea.hbm %s2317_s2, 6144 }
  0x38   :  { %p1996_p10 = scmp.ne.s32.totalorder %s2317_s2, %s1995_s13  ;;  %p1999_p11 = scmp.lt.u32.totalorder %s1995_s13, %s2317_s2 }
  0x3a   :  { %p2001_p12 = pnand %p1999_p11, %p1996_p10 }
  0x3c   :  { %2004 = shalt.err (!%p2001_p12)
}
  0x3d   :  { %s2005_s0 = scalar_lea.vmem %s42_s7, 6144  ;;  %p2010_p0 = scmp.lt.s32.totalorder %s42_s7, %s42_s7 }
  0x3e   :  { %p2006_p13 = scmp.ne.s32.totalorder %s42_s7, %s2005_s0  ;;  %p2011_p1 = scmp.lt.s32.totalorder %s2005_s0, %s2005_s0 }
  0x40   :  { %p2012_p2 = por %p2011_p1, %p2010_p0 }
  0x42   :  { %p2013_p3 = pnand %p2012_p2, %p2006_p13 }
  0x44   :  { %2016 = shalt.err (!%p2013_p3)
}
  0x45   :  { %47 = dma.hbm_to_vmem [thread:$0]  %s2317_s2, 6144, %s42_s7, [#allocation6], %s2074_s18, %s2074_s18, %s2075_s19  }
  0x46   :  { %s2017_s22 = scalar_lea.hbm %s2319_s4, 336 }
  0x47   :  { %p2018_p4 = scmp.ne.s32.totalorder %s2319_s4, %s2017_s22  ;;  %p2021_p5 = scmp.lt.u32.totalorder %s2017_s22, %s2319_s4 }
  0x49   :  { %p2023_p6 = pnand %p2021_p5, %p2018_p4 }
  0x4b   :  { %2026 = shalt.err (!%p2023_p6)
}
  0x4c   :  { %s2027_s27 = scalar_lea.vmem %s67_s9, 336  ;;  %s2031_s28 = scalar_lea.vmem %s67_s9, 352 }
  0x4d   :  { %p2028_p7 = scmp.ne.s32.totalorder %s67_s9, %s2027_s27  ;;  %p2032_p8 = scmp.lt.s32.totalorder %s67_s9, %s67_s9 }
  0x4e   :  { %p2033_p9 = scmp.lt.s32.totalorder %s2031_s28, %s2027_s27 }
  0x50   :  { %p2034_p10 = por %p2033_p9, %p2032_p8 }
  0x52   :  { %p2035_p11 = pnand %p2034_p10, %p2028_p7 }
  0x54   :  { %2038 = shalt.err (!%p2035_p11)
}
  0x55   :  { %69 = dma.hbm_to_vmem [thread:$0]  %s2319_s4, 336, %s67_s9, [#allocation9]  }
  0x56   :  { %2061 = dma.done.wait [#allocation3], 128  }
  0x57   :  { %2062 = vsyncadd [#allocation3], 4294967168 }
  0x58   :  { %2063 = dma.done.wait [#allocation6], 7680  }
  0x59   :  { %2064 = vsyncadd [#allocation6], 4294959616 }
  0x5a   :  { %2065 = dma.done.wait [#allocation9], 3408  }
  0x5b   :  { %2066 = vsyncadd [#allocation9], 4294963888  ;;  %v2078_v0 = vmov 0   ;;  %v1821_v1 = vld [vmem:[#allocation5 + $0x4] ss:$24 sps:$4 sm:$0xff]   ;;  %vm162_vm0 = vcmask 261120  }
  0x5c   :  { %198 = vmatprep.mubr.bf16.mxu0 %v2078_v0  ;;  %239 = vmatprep.mubr.bf16.mxu1 %v2078_v0  ;;  %v1823_v2 = vld [vmem:[#allocation5 + $0xc] ss:$24 sps:$4 sm:$0xff]   ;;  %v1825_v3 = vld [vmem:[#allocation5] ss:$24 sps:$4 sm:$0xff]   ;;  %v1829_v6 = vld [vmem:[#allocation5 + $0x3c] ss:$24 sps:$4 sm:$0xff]  }
  0x5d   :  { %166 = vmatprep.subr.bf16.mxu0 %v1821_v1  ;;  %v1826_v4 = vld [vmem:[#allocation5 + $0x8] ss:$24 sps:$4 sm:$0xff]   ;;  %207 = vmatprep.subr.bf16.mxu1 %v1823_v2  ;;  %v1827_v5 = vld [vmem:[#allocation5 + $0x34] ss:$24 sps:$4 sm:$0xff]   ;;  %v1832_v8 = vld [vmem:[#allocation5 + $0x38] ss:$24 sps:$4 sm:$0xff]  }
  0x5e   :  { %167 = vmatpush1.bf16.msra.mxu0 %v1825_v3  ;;  %208 = vmatpush1.bf16.msra.mxu1 %v1826_v4  ;;  %v1831_v7 = vld [vmem:[#allocation5 + $0x30] ss:$24 sps:$4 sm:$0xff]   ;;  %v86_v9 = vld [vmem:[#allocation2] sm:$0xff]  ;;  %v1835_v10 = vld [vmem:[#allocation5 + $0x14] ss:$24 sps:$4 sm:$0xff]   ;;  %vm2081_vm1 = vmmov 0  }
  0x5f   :  { %168 = vmatprep.subr.bf16.mxu0 %v1827_v5  ;;  %209 = vmatprep.subr.bf16.mxu1 %v1829_v6  ;;  %v87_v11 = vpack.c.bf16 %v86_v9, %v86_v9  ;;  %v1833_v12 = vld [vmem:[#allocation5 + $0x10] ss:$24 sps:$4 sm:$0xff]   ;;  %v1838_v13 = vld [vmem:[#allocation5 + $0x44] ss:$24 sps:$4 sm:$0xff]   ;;  %v1836_v14 = vld [vmem:[#allocation5 + $0x40] ss:$24 sps:$4 sm:$0xff]  }
  0x60   :  { %v1839_v15 = vld [vmem:[#allocation7 + $0x40] sm:$0xff]   ;;  %v1841_v17 = vld [vmem:[#allocation7 + $0x48] sm:$0xff]   ;;  %v1843_v19 = vld [vmem:[#allocation7 + $0x50] sm:$0xff]   ;;  %s2082_s4 = smov [#allocation11]  }
  0x61   :  { %v1840_v16 = vld [vmem:[#allocation7] sm:$0xff]   ;;  %v1842_v18 = vld [vmem:[#allocation7 + $0x8] sm:$0xff]   ;;  %v1844_v20 = vld [vmem:[#allocation7 + $0x10] sm:$0xff]   ;;  %s1553_s19 = sshll.u32 %s2082_s4, 4  ;;  %s1554_s19 = int_to_ptr.vmem [resolvable:$true] %s1553_s19 }
  0x62   :  { %169 = vmatpush1.bf16.msra.mxu0 %v1831_v7  ;;  %210 = vmatpush1.bf16.msra.mxu1 %v1832_v8  ;;  %v1845_v21 = vld [vmem:[#allocation7 + $0x58] sm:$0xff]   ;;  %v1847_v23 = vld [vmem:[#allocation7 + $0x60] sm:$0xff]   ;;  %v1849_v25 = vld [vmem:[#allocation7 + $0x68] sm:$0xff]   ;;  %s2039_s29 = scalar_lea.vmem %s1554_s19, 384  ;;  %p2044_p13 = scmp.lt.s32.totalorder %s1554_s19, %s1554_s19 }
  0x63   :  { %248 = vmatprep.subr.bf16.mxu0 %v1835_v10  ;;  %1654 = vmatprep.subr.bf16.mxu1 %v1839_v15  ;;  %v1846_v22 = vld [vmem:[#allocation7 + $0x18] sm:$0xff]   ;;  %v1848_v24 = vld [vmem:[#allocation7 + $0x20] sm:$0xff]   ;;  %v1850_v26 = vld [vmem:[#allocation7 + $0x28] sm:$0xff]   ;;  %p2040_p12 = scmp.ne.s32.totalorder %s1554_s19, %s2039_s29  ;;  %p2045_p0 = scmp.lt.s32.totalorder %s2039_s29, %s2039_s29 }
  0x64   :  { %v1851_v27 = vld [vmem:[#allocation7 + $0x70] sm:$0xff]   ;;  %v1853_v29 = vld [vmem:[#allocation7 + $0x78] sm:$0xff]   ;;  %v1855_v31 = vld [vmem:[#allocation7 + $0xc0] sm:$0xff]  }
  0x65   :  { %1576 = vmatmul.mubr.msk.bf16.vlgmr.msra.gmra.mrb[0].mxu0 %vm162_vm0, %v87_v11  ;;  %1577 = vmatmul.mubr.msk.bf16.vlgmr.msra.gmra.mrb[0].mxu1 %vm162_vm0, %v87_v11  ;;  %v1852_v28 = vld [vmem:[#allocation7 + $0x30] sm:$0xff]   ;;  %v1854_v30 = vld [vmem:[#allocation7 + $0x38] sm:$0xff]   ;;  %p2046_p1 = por %p2045_p0, %p2044_p13 }
  0x66   :  { %249 = vmatpush1.bf16.msra.mxu0 %v1833_v12  ;;  %280 = vmatprep.mubr.bf16.mxu0 %v2078_v0 }
  0x67   :  { %250 = vmatprep.subr.bf16.mxu0 %v1838_v13  ;;  %1655 = vmatpush3.bf16.msra.mxu1 %v1840_v16  ;;  %p2047_p2 = pnand %p2046_p1, %p2040_p12 }
  0x68   :  { %1656 = vmatprep.subr.bf16.mxu1 %v1841_v17 }
  0x6a   :  { %251 = vmatpush1.bf16.msra.mxu0 %v1836_v14 }
  0x6b   :  { %1657 = vmatpush3.bf16.msra.mxu1 %v1842_v18 }
  0x6c   :  { %1658 = vmatprep.subr.bf16.mxu1 %v1843_v19 }
  0x6d   :  { %1578 = vmatmul.mubr.msk.bf16.vlgmr.msra.gmra.mrb[4].mxu0 %vm162_vm0, %v87_v11 }
  0x6f   :  { %1659 = vmatpush3.bf16.msra.mxu1 %v1844_v20 }
  0x70   :  { %1660 = vmatprep.subr.bf16.mxu1 %v1845_v21 }
  0x73   :  { %1661 = vmatpush3.bf16.msra.mxu1 %v1846_v22 }
  0x74   :  { %1662 = vmatprep.subr.bf16.mxu1 %v1847_v23 }
  0x77   :  { %1663 = vmatpush3.bf16.msra.mxu1 %v1848_v24 }
  0x78   :  { %1664 = vmatprep.subr.bf16.mxu1 %v1849_v25 }
  0x7b   :  { %1665 = vmatpush3.bf16.msra.mxu1 %v1850_v26 }
  0x7c   :  { %1666 = vmatprep.subr.bf16.mxu1 %v1851_v27 }
  0x7f   :  { %1667 = vmatpush3.bf16.msra.mxu1 %v1852_v28 }
  0x80   :  { %1668 = vmatprep.subr.bf16.mxu1 %v1853_v29 }
  0x83   :  { %1669 = vmatpush3.bf16.msra.mxu1 %v1854_v30 }
  0x84   :  { %1685 = vmatprep.subr.bf16.mxu1 %v1855_v31 }
 0x138   :  { %v2179_v32 = vpop.f32.mrb[0].mxu0  ;;  %v2181_v33 = vpop.f32.mrb[0].mxu1 }
 0x139   :  { %v289_v34 = vrot.slane %v2179_v32, 4  ;;  %v301_v35 = vrot.slane %v2181_v33, 4  ;;  %v2185_v36 = vpop.f32.mrb[1].mxu0  ;;  %v2187_v37 = vpop.f32.mrb[1].mxu1 }
 0x13a   :  { %v295_v38 = vrot.slane %v2185_v36, 4  ;;  %v307_v39 = vrot.slane %v2187_v37, 4  ;;  %v204_v40 = vpop.f32.mrb[2].mxu0  ;;  %v245_v41 = vpop.f32.mrb[2].mxu1 }
 0x13b   :  { %v290_v42 = vadd.f32 %v289_v34, %v2179_v32  ;;  %v302_v43 = vadd.f32 %v301_v35, %v2181_v33  ;;  %v205_v44 = vpop.f32.mrb[3].mxu0  ;;  %v246_v45 = vpop.f32.mrb[3].mxu1 }
 0x13c   :  { %v296_v46 = vadd.f32 %v295_v38, %v2185_v36  ;;  %v308_v47 = vadd.f32 %v307_v39, %v2187_v37 }
 0x13d   :  { %v291_v48 = vrot.slane %v290_v42, 2  ;;  %v303_v49 = vrot.slane %v302_v43, 2 }
 0x13e   :  { %v297_v50 = vrot.slane %v296_v46, 2  ;;  %v309_v51 = vrot.slane %v308_v47, 2 }
 0x13f   :  { %v292_v52 = vadd.f32 %v291_v48, %v290_v42  ;;  %v304_v53 = vadd.f32 %v303_v49, %v302_v43 }
 0x140   :  { %v298_v54 = vadd.f32 %v297_v50, %v296_v46  ;;  %v310_v55 = vadd.f32 %v309_v51, %v308_v47  ;;  %v2195_v56 = vpop.f32.mrb[4].mxu0 }
 0x141   :  { %v293_v57 = vrot.slane %v292_v52, 1  ;;  %v305_v58 = vrot.slane %v304_v53, 1  ;;  %v313_v59 = vrot.slane %v2195_v56, 4  ;;  %v2198_v60 = vpop.f32.mrb[5].mxu0 }
 0x142   :  { %v299_v61 = vrot.slane %v298_v54, 1  ;;  %v311_v62 = vrot.slane %v310_v55, 1  ;;  %v319_v63 = vrot.slane %v2198_v60, 4  ;;  %v286_v0 = vpop.f32.mrb[6].mxu0 }
 0x143   :  { %v294_v1 = vadd.f32 %v293_v57, %v292_v52  ;;  %v306_v2 = vadd.f32 %v305_v58, %v304_v53  ;;  %v314_v3 = vadd.f32 %v313_v59, %v2195_v56  ;;  %v287_v4 = vpop.f32.mrb[7].mxu0 }
 0x144   :  { %v300_v5 = vadd.f32 %v299_v61, %v298_v54  ;;  %v312_v6 = vadd.f32 %v311_v62, %v310_v55  ;;  %v320_v7 = vadd.f32 %v319_v63, %v2198_v60 }
 0x145   :  { %v2203_v8 = vmul.f32 0.125, %v294_v1  ;;  %v2205_v9 = vmul.f32 0.125, %v306_v2  ;;  %v315_v10 = vrot.slane %v314_v3, 2 }
 0x146   :  { %v2207_v11 = vmul.f32 0.125, %v300_v5  ;;  %v2209_v12 = vmul.f32 0.125, %v312_v6  ;;  %v321_v13 = vrot.slane %v320_v7, 2 }
 0x147   :  { %v332_v14 = vsub.f32 %v2179_v32, %v2203_v8  ;;  %v334_v15 = vsub.f32 %v2181_v33, %v2205_v9  ;;  %v316_v16 = vadd.f32 %v315_v10, %v314_v3 }
 0x148   :  { %v333_v17 = vsub.f32 %v2185_v36, %v2207_v11  ;;  %v335_v18 = vsub.f32 %v2187_v37, %v2209_v12  ;;  %v322_v19 = vadd.f32 %v321_v13, %v320_v7 }
 0x149   :  { %v338_v20 = vmul.f32 %v332_v14, %v332_v14  ;;  %v340_v21 = vmul.f32 %v334_v15, %v334_v15  ;;  %v317_v22 = vrot.slane %v316_v16, 1 }
 0x14a   :  { %v339_v23 = vmul.f32 %v333_v17, %v333_v17  ;;  %v341_v24 = vmul.f32 %v335_v18, %v335_v18  ;;  %v323_v25 = vrot.slane %v322_v19, 1 }
 0x14b   :  { %v344_v26 = vrot.slane %v338_v20, 4  ;;  %v356_v27 = vrot.slane %v340_v21, 4  ;;  %v318_v28 = vadd.f32 %v317_v22, %v316_v16 }
 0x14c   :  { %v350_v29 = vrot.slane %v339_v23, 4  ;;  %v362_v30 = vrot.slane %v341_v24, 4  ;;  %v324_v31 = vadd.f32 %v323_v25, %v322_v19  ;;  %v410_v25 = vlaneseq }
 0x14d   :  { %v345_v34 = vadd.f32 %v344_v26, %v338_v20  ;;  %v357_v35 = vadd.f32 %v356_v27, %v340_v21  ;;  %v2219_v38 = vmul.f32 0.125, %v318_v28 }
 0x14e   :  { %v351_v39 = vadd.f32 %v350_v29, %v339_v23  ;;  %v363_v40 = vadd.f32 %v362_v30, %v341_v24  ;;  %v2221_v41 = vmul.f32 0.125, %v324_v31  ;;  %v2079_v23 = vmov 1966171168  }
 0x14f   :  { %v346_v42 = vrot.slane %v345_v34, 2  ;;  %v358_v43 = vrot.slane %v357_v35, 2  ;;  %v336_v44 = vsub.f32 %v2195_v56, %v2219_v38  ;;  %v408_v24 = vunpack.c.l.s4 %v2079_v23 }
 0x150   :  { %v352_v45 = vrot.slane %v351_v39, 2  ;;  %v364_v46 = vrot.slane %v363_v40, 2  ;;  %v337_v47 = vsub.f32 %v2198_v60, %v2221_v41  ;;  %v2227_v31 = vshrl.u32 %v410_v25, 7 }
 0x151   :  { %v347_v48 = vadd.f32 %v346_v42, %v345_v34  ;;  %v359_v49 = vadd.f32 %v358_v43, %v357_v35  ;;  %v342_v50 = vmul.f32 %v336_v44, %v336_v44  ;;  %v409_v30 = vunpack.c.0.s8 %v408_v24 }
 0x152   :  { %v353_v51 = vadd.f32 %v352_v45, %v351_v39  ;;  %v365_v52 = vadd.f32 %v364_v46, %v363_v40  ;;  %v343_v53 = vmul.f32 %v337_v47, %v337_v47 }
 0x153   :  { %v348_v54 = vrot.slane %v347_v48, 1  ;;  %v360_v55 = vrot.slane %v359_v49, 1  ;;  %v368_v57 = vrot.slane %v342_v50, 4  ;;  %v412_v40 = vsub.s32 %v409_v30, %v2227_v31 }
 0x154   :  { %v354_v58 = vrot.slane %v353_v51, 1  ;;  %v366_v59 = vrot.slane %v365_v52, 1  ;;  %v374_v61 = vrot.slane %v343_v53, 4 }
 0x155   :  { %v349_v62 = vadd.f32 %v348_v54, %v347_v48  ;;  %v361_v63 = vadd.f32 %v360_v55, %v359_v49  ;;  %v369_v0 = vadd.f32 %v368_v57, %v342_v50  ;;  %v100_v55 = vld [vmem:[#allocation10] sm:$0x3f]  ;;  %v465_v57 = vsub.s32 4, %v2227_v31 }
 0x156   :  { %v355_v1 = vadd.f32 %v354_v58, %v353_v51  ;;  %v367_v2 = vadd.f32 %v366_v59, %v365_v52  ;;  %v375_v3 = vadd.f32 %v374_v61, %v343_v53  ;;  %v469_v59 = vsub.s32 5, %v2227_v31 }
 0x157   :  { %v380_v4 = vmul.f32 0.125, %v349_v62  ;;  %v382_v5 = vmul.f32 0.125, %v361_v63  ;;  %v370_v6 = vrot.slane %v369_v0, 2  ;;  %v2233_v61 = vsub.s32 0, %v2227_v31 }
 0x158   :  { %v381_v7 = vmul.f32 0.125, %v355_v1  ;;  %v383_v10 = vmul.f32 0.125, %v367_v2  ;;  %v376_v13 = vrot.slane %v375_v3, 2  ;;  %v453_v62 = vsub.s32 1, %v2227_v31 }
 0x159   :  { %v386_v14 = vadd.f32 1e-05, %v380_v4  ;;  %v388_v15 = vadd.f32 1e-05, %v382_v5  ;;  %v371_v16 = vadd.f32 %v370_v6, %v369_v0  ;;  %v457_v63 = vsub.s32 2, %v2227_v31 }
 0x15a   :  { %v387_v17 = vadd.f32 1e-05, %v381_v7  ;;  %v389_v18 = vadd.f32 1e-05, %v383_v10  ;;  %v377_v19 = vadd.f32 %v376_v13, %v375_v3  ;;  %v461_v0 = vsub.s32 3, %v2227_v31 }
 0x15b   :  { %1911 = vrsqrt.f32 %v386_v14  ;;  %v372_v20 = vrot.slane %v371_v16, 1 }
 0x15c   :  { %1913 = vrsqrt.f32 %v388_v15  ;;  %v378_v21 = vrot.slane %v377_v19, 1 }
 0x15d   :  { %1915 = vrsqrt.f32 %v387_v17  ;;  %v373_v22 = vadd.f32 %v372_v20, %v371_v16 }
 0x15e   :  { %1917 = vrsqrt.f32 %v389_v18  ;;  %v379_v26 = vadd.f32 %v378_v21, %v377_v19 }
 0x15f   :  { %v384_v27 = vmul.f32 0.125, %v373_v22 }
 0x160   :  { %v385_v28 = vmul.f32 0.125, %v379_v26 }
 0x161   :  { %v390_v29 = vadd.f32 1e-05, %v384_v27 }
 0x162   :  { %v391_v34 = vadd.f32 1e-05, %v385_v28 }
 0x163   :  { %1919 = vrsqrt.f32 %v390_v29 }
 0x164   :  { %1921 = vrsqrt.f32 %v391_v34 }
 0x165   :  { %v1912_v35 = vpop.eup %1911 }
 0x166   :  { %v1914_v39 = vpop.eup %1913 }
 0x167   :  { %v1916_v42 = vpop.eup %1915 }
 0x168   :  { %v1918_v43 = vpop.eup %1917  ;;  %v404_v44 = vcombine.low %v1912_v35, %v1916_v42 }
 0x169   :  { %v405_v45 = vcombine.low %v1914_v39, %v1918_v43 }
 0x16a   :  { %v413_v46 = vrot.slane %v404_v44, %v412_v40 }
 0x16b   :  { %v420_v47 = vrot.slane %v405_v45, %v412_v40 }
 0x16d   :  { %v1920_v48 = vpop.eup %1919  ;;  %v428_v49 = vcombine.low %v413_v46, %v420_v47  ;;  %v1856_v47 = vld [vmem:[#allocation7 + $0x80] sm:$0xff]  }
 0x16e   :  { %v1922_v50 = vpop.eup %1921 }
 0x16f   :  { %v406_v51 = vcombine.low %v1920_v48, %v1922_v50  ;;  %v435_v53 = vrot.slane %v428_v49, %v412_v40  ;;  %v1857_v48 = vld [vmem:[#allocation7 + $0xc8] sm:$0xff]  }
 0x170   :  { %v1858_v50 = vld [vmem:[#allocation7 + $0x88] sm:$0xff]  }
 0x171   :  { %v427_v52 = vrot.slane %v406_v51, %v412_v40  ;;  %v1859_v51 = vld [vmem:[#allocation7 + $0xd0] sm:$0xff]  }
 0x173   :  { %v442_v54 = vrot.slane %v427_v52, %v412_v40  ;;  %v1860_v52 = vld [vmem:[#allocation7 + $0x90] sm:$0xff]  }
 0x175   :  { %v443_v58 = vcombine.low %v435_v53, %v442_v54  ;;  %v1861_v53 = vld [vmem:[#allocation7 + $0xd8] sm:$0xff]  }
 0x176   :  { %v1862_v54 = vld [vmem:[#allocation7 + $0x98] sm:$0xff]  }
 0x177   :  { %v445_v1 = vmul.f32 %v443_v58, %v100_v55  ;;  %v1863_v55 = vld [vmem:[#allocation7 + $0xe0] sm:$0xff]   ;;  %v1865_v58 = vld [vmem:[#allocation7 + $0xe8] sm:$0xff]  }
 0x179   :  { %v466_v2 = vrot.slane %v445_v1, %v465_v57  ;;  %v470_v3 = vrot.slane %v445_v1, %v469_v59  ;;  %v450_v4 = vrot.slane %v445_v1, %v2233_v61  ;;  %v454_v5 = vrot.slane %v445_v1, %v453_v62 }
 0x17a   :  { %v458_v6 = vrot.slane %v445_v1, %v457_v63  ;;  %v462_v7 = vrot.slane %v445_v1, %v461_v0  ;;  %v1870_v1 = vld [vmem:[#allocation7 + $0xb8] sm:$0xff]  }
 0x17b   :  { %v481_v10 = vmul.f32 %v466_v2, %v2219_v38  ;;  %v482_v13 = vmul.f32 %v470_v3, %v2221_v41  ;;  %v536_v14 = vmul.f32 %v470_v3, %v2198_v60  ;;  %v477_v15 = vmul.f32 %v450_v4, %v2203_v8  ;;  %v1871_v3 = vld [vmem:[#allocation7 + $0x140] sm:$0xff]  }
 0x17c   :  { %v478_v16 = vmul.f32 %v454_v5, %v2207_v11  ;;  %v479_v17 = vmul.f32 %v458_v6, %v2205_v9  ;;  %v480_v18 = vmul.f32 %v462_v7, %v2209_v12  ;;  %v532_v19 = vmul.f32 %v454_v5, %v2185_v36  ;;  %v101_v12 = vld [vmem:[#allocation10 + $0x6] sm:$0x3f] }
 0x17d   :  { %v491_v20 = vcombine.low %v481_v10, %v482_v13  ;;  %v531_v21 = vmul.f32 %v450_v4, %v2179_v32  ;;  %v534_v22 = vmul.f32 %v462_v7, %v2187_v37  ;;  %v533_v38 = vmul.f32 %v458_v6, %v2181_v33  ;;  %v1872_v5 = vld [vmem:[#allocation7 + $0x100] sm:$0xff]   ;;  %v1873_v7 = vld [vmem:[#allocation7 + $0x148] sm:$0xff]  }
 0x17e   :  { %v489_v41 = vcombine.low %v477_v15, %v478_v16  ;;  %v490_v23 = vcombine.low %v479_v17, %v480_v18  ;;  %v535_v60 = vmul.f32 %v466_v2, %v2195_v56  ;;  %v1874_v13 = vld [vmem:[#allocation7 + $0x108] sm:$0xff]   ;;  %v1876_v15 = vld [vmem:[#allocation7 + $0x110] sm:$0xff]   ;;  %v1877_v16 = vld [vmem:[#allocation7 + $0x158] sm:$0xff]  }
 0x17f   :  { %v512_v8 = vrot.slane %v491_v20, %v412_v40  ;;  %v1878_v17 = vld [vmem:[#allocation7 + $0x118] sm:$0xff]   ;;  %v1879_v18 = vld [vmem:[#allocation7 + $0x160] sm:$0xff]   ;;  %v1881_v20 = vld [vmem:[#allocation7 + $0x168] sm:$0xff]  }
 0x180   :  { %v498_v24 = vrot.slane %v489_v41, %v412_v40  ;;  %v505_v11 = vrot.slane %v490_v23, %v412_v40  ;;  %v1885_v41 = vld [vmem:[#allocation7 + $0x178] sm:$0xff]  }
 0x181   :  { %v527_v9 = vrot.slane %v512_v8, %v412_v40  ;;  %v1886_v23 = vld [vmem:[#allocation7 + $0x138] sm:$0xff]  }
 0x182   :  { %v513_v25 = vcombine.low %v498_v24, %v505_v11  ;;  %v1887_v24 = vld [vmem:[#allocation8] sm:$0xff]   ;;  %v2080_v11 = vmov 0.0  }
 0x183   :  { %1747 = vmatprep.subr.bf16.mxu0 %v2080_v11  ;;  %1763 = vmatprep.mubr.msk.bf16.mxu0 %vm2081_vm1, %v2080_v11 }
 0x184   :  { %v520_v26 = vrot.slane %v513_v25, %v412_v40  ;;  %1748 = vmatpush3.bf16.msra.mxu0 %v1887_v24  ;;  %v1888_v25 = vld [vmem:[#allocation8 + $0x8] sm:$0xff]  }
 0x185   :  { %1749 = vmatprep.subr.bf16.mxu0 %v2080_v11 }
 0x186   :  { %v528_v27 = vcombine.low %v520_v26, %v527_v9  ;;  %v1889_v9 = vld [vmem:[#allocation8 + $0x10] sm:$0xff]   ;;  %v1890_v26 = vld [vmem:[#allocation8 + $0x18] sm:$0xff]  }
 0x188   :  { %v530_v36 = vsub.f32 %v101_v12, %v528_v27  ;;  %1750 = vmatpush3.bf16.msra.mxu0 %v1888_v25  ;;  %v1891_v12 = vld [vmem:[#allocation8 + $0x20] sm:$0xff]   ;;  %v1892_v27 = vld [vmem:[#allocation8 + $0x28] sm:$0xff]  }
 0x189   :  { %1751 = vmatprep.subr.bf16.mxu0 %v2080_v11 }
 0x18a   :  { %v545_v28 = vrot.slane %v530_v36, %v453_v62  ;;  %v541_v32 = vrot.slane %v530_v36, %v2233_v61  ;;  %v553_v29 = vrot.slane %v530_v36, %v461_v0  ;;  %v549_v37 = vrot.slane %v530_v36, %v457_v63  ;;  %v1867_v62 = vld [vmem:[#allocation7 + $0xf0] sm:$0xff]   ;;  %v1869_v0 = vld [vmem:[#allocation7 + $0xf8] sm:$0xff]  }
 0x18b   :  { %v561_v30 = vrot.slane %v530_v36, %v469_v59  ;;  %v557_v33 = vrot.slane %v530_v36, %v465_v57  ;;  %v1864_v57 = vld [vmem:[#allocation7 + $0xa0] sm:$0xff]   ;;  %v1866_v59 = vld [vmem:[#allocation7 + $0xa8] sm:$0xff]   ;;  %v1868_v63 = vld [vmem:[#allocation7 + $0xb0] sm:$0xff]  }
 0x18c   :  { %v569_v31 = vadd.f32 %v545_v28, %v532_v19  ;;  %v568_v34 = vadd.f32 %v541_v32, %v531_v21  ;;  %v571_v35 = vadd.f32 %v553_v29, %v534_v22  ;;  %v570_v56 = vadd.f32 %v549_v37, %v533_v38  ;;  %v1880_v19 = vld [vmem:[#allocation7 + $0x120] sm:$0xff]   ;;  %v1882_v21 = vld [vmem:[#allocation7 + $0x128] sm:$0xff]   ;;  %v1883_v22 = vld [vmem:[#allocation7 + $0x170] sm:$0xff]   ;;  %1752 = vmatpush3.bf16.msra.mxu0 %v1889_v9 }
 0x18d   :  { %v573_v39 = vadd.f32 %v561_v30, %v536_v14  ;;  %v2252_v42 = vadd.f32 %v557_v33, %v535_v60  ;;  %v1875_v14 = vld [vmem:[#allocation7 + $0x150] sm:$0xff]   ;;  %1753 = vmatprep.subr.bf16.mxu0 %v2080_v11  ;;  %v1894_v28 = vld [vmem:[#allocation8 + $0x38] sm:$0xff]   ;;  %v1896_v9 = vld [vmem:[#allocation8 + $0x48] sm:$0xff]  }
 0x18e   :  { %v575_v43 = vmax.f32 %v569_v31, 0.0  ;;  %v574_v44 = vmax.f32 %v568_v34, 0.0  ;;  %v577_v40 = vmax.f32 %v571_v35, 0.0  ;;  %v576_v2 = vmax.f32 %v570_v56, 0.0  ;;  %v1884_v38 = vld [vmem:[#allocation7 + $0x130] sm:$0xff]  }
 0x18f   :  { %v579_v4 = vmax.f32 %v573_v39, 0.0  ;;  %v578_v60 = vmax.f32 %v2252_v42, 0.0  ;;  %v1893_v36 = vld [vmem:[#allocation8 + $0x30] sm:$0xff]  }
 0x190   :  { %v581_v45 = vpack.c.bf16 %v575_v43, %v575_v43  ;;  %v580_v46 = vpack.c.bf16 %v574_v44, %v574_v44  ;;  %v902_v49 = vpack.c.bf16 %v577_v40, %v577_v40  ;;  %v901_v6 = vpack.c.bf16 %v576_v2, %v576_v2  ;;  %1754 = vmatpush3.bf16.msra.mxu0 %v1890_v26  ;;  %v750_v2 = vld [vmem:[#allocation10 + $0xc] sm:$0x1] }
 0x191   :  { %v1225_v10 = vpack.c.bf16 %v579_v4, %v579_v4  ;;  %v1224_v8 = vpack.c.bf16 %v578_v60, %v578_v60  ;;  %1755 = vmatprep.subr.bf16.mxu0 %v2080_v11 }
 0x192   :  { %742 = vmatprep.mubr.bf16.mxu1 %v581_v45 }
 0x193   :  { %743 = vmatmul.mubr.bf16.vlgmr.msra.gmra.mrb[4].mxu1 %v580_v46 }
 0x194   :  { %1686 = vmatpush3.bf16.msra.mxu1 %v1856_v47  ;;  %1064 = vmatprep.mubr.bf16.mxu1 %v902_v49 }
 0x195   :  { %1687 = vmatprep.subr.bf16.mxu1 %v1857_v48  ;;  %1756 = vmatpush3.bf16.msra.mxu0 %v1891_v12 }
 0x196   :  { %1757 = vmatprep.subr.bf16.mxu0 %v2080_v11 }
 0x198   :  { %1688 = vmatpush3.bf16.msra.mxu1 %v1858_v50 }
 0x199   :  { %1689 = vmatprep.subr.bf16.mxu1 %v1859_v51  ;;  %1758 = vmatpush3.bf16.msra.mxu0 %v1892_v27 }
 0x19a   :  { %1759 = vmatprep.subr.bf16.mxu0 %v2080_v11 }
 0x19c   :  { %1690 = vmatpush3.bf16.msra.mxu1 %v1860_v52 }
 0x19d   :  { %1691 = vmatprep.subr.bf16.mxu1 %v1861_v53  ;;  %1760 = vmatpush3.bf16.msra.mxu0 %v1893_v36 }
 0x19e   :  { %1761 = vmatprep.subr.bf16.mxu0 %v2080_v11 }
 0x1a0   :  { %1692 = vmatpush3.bf16.msra.mxu1 %v1862_v54 }
 0x1a1   :  { %1693 = vmatprep.subr.bf16.mxu1 %v1863_v55  ;;  %1762 = vmatpush3.bf16.msra.mxu0 %v1894_v28 }
 0x1a2   :  { %1767 = vmatprep.subr.bf16.mxu0 %v2080_v11 }
 0x1a4   :  { %1694 = vmatpush3.bf16.msra.mxu1 %v1864_v57 }
 0x1a5   :  { %1695 = vmatprep.subr.bf16.mxu1 %v1865_v58 }
 0x1a8   :  { %1696 = vmatpush3.bf16.msra.mxu1 %v1866_v59 }
 0x1a9   :  { %1697 = vmatprep.subr.bf16.mxu1 %v1867_v62 }
 0x1ac   :  { %1698 = vmatpush3.bf16.msra.mxu1 %v1868_v63 }
 0x1ad   :  { %1699 = vmatprep.subr.bf16.mxu1 %v1869_v0 }
 0x1b0   :  { %1700 = vmatpush3.bf16.msra.mxu1 %v1870_v1 }
 0x1b1   :  { %1716 = vmatprep.subr.bf16.mxu1 %v1871_v3 }
 0x1b3   :  { %1065 = vmatmul.mubr.bf16.vlgmr.msra.gmra.mrb[8].mxu1 %v901_v6 }
 0x1b4   :  { %1717 = vmatpush3.bf16.msra.mxu1 %v1872_v5  ;;  %1387 = vmatprep.mubr.bf16.mxu1 %v1225_v10  ;;  %v751_v10 = vld [vmem:[#allocation10 + $0xf] sm:$0x1] }
 0x1b5   :  { %1718 = vmatprep.subr.bf16.mxu1 %v1873_v7 }
 0x1b8   :  { %1719 = vmatpush3.bf16.msra.mxu1 %v1874_v13 }
 0x1b9   :  { %1720 = vmatprep.subr.bf16.mxu1 %v1875_v14 }
 0x1bc   :  { %1721 = vmatpush3.bf16.msra.mxu1 %v1876_v15 }
 0x1bd   :  { %1722 = vmatprep.subr.bf16.mxu1 %v1877_v16 }
 0x1c0   :  { %1723 = vmatpush3.bf16.msra.mxu1 %v1878_v17 }
 0x1c1   :  { %1724 = vmatprep.subr.bf16.mxu1 %v1879_v18 }
 0x1c4   :  { %1725 = vmatpush3.bf16.msra.mxu1 %v1880_v19 }
 0x1c5   :  { %1726 = vmatprep.subr.bf16.mxu1 %v1881_v20 }
 0x1c8   :  { %1727 = vmatpush3.bf16.msra.mxu1 %v1882_v21 }
 0x1c9   :  { %1728 = vmatprep.subr.bf16.mxu1 %v1883_v22 }
 0x1cc   :  { %1729 = vmatpush3.bf16.msra.mxu1 %v1884_v38 }
 0x1cd   :  { %1730 = vmatprep.subr.bf16.mxu1 %v1885_v41 }
 0x1d0   :  { %1731 = vmatpush3.bf16.msra.mxu1 %v1886_v23  ;;  %v1895_v23 = vld [vmem:[#allocation8 + $0x40] sm:$0xff]  }
 0x1d3   :  { %1388 = vmatmul.mubr.bf16.vlgmr.msra.gmra.mrb[12].mxu1 %v1224_v8 }
 0x266   :  { %v1670_v32 = vpop.f32.mrb[4].mxu1 }
 0x267   :  { %v1671_v29 = vpop.f32.mrb[5].mxu1 }
 0x268   :  { %v1672_v37 = vadd.f32 %v1671_v29, %v1670_v32  ;;  %v1673_v30 = vpop.f32.mrb[6].mxu1 }
 0x269   :  { %v1674_v33 = vpop.f32.mrb[7].mxu1 }
 0x26a   :  { %v752_v31 = vrot.slane %v1672_v37, 4 }
 0x26c   :  { %v753_v34 = vadd.f32 %v1672_v37, %v752_v31  ;;  %v1898_v31 = vld [vmem:[#allocation8 + $0x58] sm:$0xff]  }
 0x26e   :  { %v754_v35 = vrot.slane %v753_v34, 2 }
 0x270   :  { %v755_v56 = vadd.f32 %v754_v35, %v753_v34 }
 0x272   :  { %v756_v39 = vrot.slane %v755_v56, 1 }
 0x274   :  { %v757_v42 = vadd.f32 %v756_v39, %v755_v56  ;;  %v1899_v56 = vld [vmem:[#allocation8 + $0x60] sm:$0xff]   ;;  %v1072_v39 = vld [vmem:[#allocation10 + $0xd] sm:$0x1] }
 0x276   :  { %v758_v43 = vmul.f32 0.125, %v757_v42 }
 0x278   :  { %v759_v44 = vsub.f32 %v1672_v37, %v758_v43 }
 0x27a   :  { %v760_v40 = vmul.f32 %v759_v44, %v759_v44 }
 0x27c   :  { %v761_v45 = vrot.slane %v760_v40, 4 }
 0x27e   :  { %v762_v46 = vadd.f32 %v761_v45, %v760_v40  ;;  %v1900_v40 = vld [vmem:[#allocation8 + $0x68] sm:$0xff]  }
 0x280   :  { %v763_v47 = vrot.slane %v762_v46, 2 }
 0x282   :  { %v764_v48 = vadd.f32 %v763_v47, %v762_v46  ;;  %v1073_v47 = vld [vmem:[#allocation10 + $0x10] sm:$0x1] }
 0x284   :  { %v765_v49 = vrot.slane %v764_v48, 1 }
 0x286   :  { %v766_v50 = vadd.f32 %v765_v49, %v764_v48  ;;  %v1701_v51 = vpop.f32.mrb[8].mxu1 }
 0x287   :  { %v1702_v52 = vpop.f32.mrb[9].mxu1 }
 0x288   :  { %v767_v53 = vmul.f32 0.125, %v766_v50  ;;  %v2266_v54 = vadd.f32 %v1702_v52, %v1701_v51  ;;  %v1704_v55 = vpop.f32.mrb[10].mxu1  ;;  %v1901_v51 = vld [vmem:[#allocation8 + $0x70] sm:$0xff]  }
 0x289   :  { %v1705_v57 = vpop.f32.mrb[11].mxu1 }
 0x28a   :  { %v768_v58 = vadd.f32 1e-05, %v767_v53  ;;  %v1074_v59 = vrot.slane %v2266_v54, 4 }
 0x28c   :  { %1923 = vrsqrt.f32 %v768_v58  ;;  %v1075_v62 = vadd.f32 %v2266_v54, %v1074_v59  ;;  %v1902_v59 = vld [vmem:[#allocation8 + $0x78] sm:$0xff]  }
 0x28e   :  { %v1076_v63 = vrot.slane %v1075_v62, 2 }
 0x290   :  { %v1077_v0 = vadd.f32 %v1076_v63, %v1075_v62 }
 0x292   :  { %v1078_v1 = vrot.slane %v1077_v0, 1 }
 0x294   :  { %v1079_v3 = vadd.f32 %v1078_v1, %v1077_v0 }
 0x296   :  { %v1924_v4 = vpop.eup %1923  ;;  %v1080_v5 = vmul.f32 0.125, %v1079_v3 }
 0x297   :  { %v770_v6 = vmul.f32 %v1924_v4, %v750_v2  ;;  %v1903_v2 = vld [vmem:[#allocation8 + $0x80] sm:$0xff]  }
 0x298   :  { %v1081_v7 = vsub.f32 %v2266_v54, %v1080_v5 }
 0x299   :  { %v771_v13 = vmul.f32 %v770_v6, %v758_v43  ;;  %v777_v14 = vrot.slane %v770_v6, %v2233_v61 }
 0x29a   :  { %v1082_v15 = vmul.f32 %v1081_v7, %v1081_v7 }
 0x29b   :  { %v772_v16 = vsub.f32 %v751_v10, %v771_v13  ;;  %v779_v18 = vmul.f32 %v1672_v37, %v777_v14  ;;  %v1897_v37 = vld [vmem:[#allocation8 + $0x50] sm:$0xff]   ;;  %v1906_v13 = vld [vmem:[#allocation8 + $0x98] sm:$0xff]   ;;  %v1907_v14 = vld [vmem:[#allocation8 + $0xa0] sm:$0xff]  }
 0x29c   :  { %v1083_v17 = vrot.slane %v1082_v15, 4  ;;  %v1905_v10 = vld [vmem:[#allocation8 + $0x90] sm:$0xff]  }
 0x29d   :  { %v784_v19 = vrot.slane %v772_v16, %v2233_v61 }
 0x29e   :  { %v1084_v20 = vadd.f32 %v1083_v17, %v1082_v15  ;;  %v1395_v15 = vld [vmem:[#allocation10 + $0xe] sm:$0x1] }
 0x29f   :  { %v786_v21 = vadd.f32 %v784_v19, %v779_v18  ;;  %v1908_v17 = vld [vmem:[#allocation8 + $0xa8] sm:$0xff]   ;;  %v1396_v19 = vld [vmem:[#allocation10 + $0x11] sm:$0x1] }
 0x2a0   :  { %v1085_v22 = vrot.slane %v1084_v20, 2 }
 0x2a1   :  { %v787_v38 = vmax.f32 %v786_v21, 0.0 }
 0x2a2   :  { %v1086_v41 = vadd.f32 %v1085_v22, %v1084_v20  ;;  %v1909_v22 = vld [vmem:[#allocation8 + $0xb0] sm:$0xff]  }
 0x2a3   :  { %v789_v60 = vpack.c.bf16 %v787_v38, %v787_v38 }
 0x2a4   :  { %v1087_v8 = vrot.slane %v1086_v41, 1 }
 0x2a5   :  { %1764 = vmatmul.mubr.bf16.vlgmr.msra.gmra.mrb[8].mxu0 %v789_v60  ;;  %v1910_v60 = vld [vmem:[#allocation8 + $0xb8] sm:$0xff]  }
 0x2a6   :  { %v1088_v24 = vadd.f32 %v1087_v8, %v1086_v41  ;;  %1768 = vmatpush3.bf16.msra.mxu0 %v1895_v23  ;;  %v1732_v25 = vpop.f32.mrb[12].mxu1  ;;  %1783 = vmatprep.mubr.msk.bf16.mxu0 %vm2081_vm1, %v2080_v11 }
 0x2a7   :  { %v1733_v26 = vpop.f32.mrb[13].mxu1  ;;  %1769 = vmatprep.subr.bf16.mxu0 %v2080_v11 }
 0x2a8   :  { %v1089_v12 = vmul.f32 0.125, %v1088_v24  ;;  %v2276_v27 = vadd.f32 %v1733_v26, %v1732_v25  ;;  %v1735_v36 = vpop.f32.mrb[14].mxu1 }
 0x2a9   :  { %v1736_v28 = vpop.f32.mrb[15].mxu1 }
 0x2aa   :  { %v1090_v32 = vadd.f32 1e-05, %v1089_v12  ;;  %v1397_v29 = vrot.slane %v2276_v27, 4  ;;  %1770 = vmatpush3.bf16.msra.mxu0 %v1896_v9  ;;  %v1595_v9 = vld [vmem:[#allocation10 + $0x12] ss:$0 sm:$0xff] }
 0x2ab   :  { %1771 = vmatprep.subr.bf16.mxu0 %v2080_v11 }
 0x2ac   :  { %1925 = vrsqrt.f32 %v1090_v32  ;;  %v1398_v30 = vadd.f32 %v2276_v27, %v1397_v29  ;;  %v1620_v29 = vld [vmem:[#allocation10 + $0x13] ss:$0 sm:$0xff] }
 0x2ae   :  { %v1399_v33 = vrot.slane %v1398_v30, 2  ;;  %1772 = vmatpush3.bf16.msra.mxu0 %v1897_v37 }
 0x2af   :  { %1773 = vmatprep.subr.bf16.mxu0 %v2080_v11 }
 0x2b0   :  { %v1400_v34 = vadd.f32 %v1399_v33, %v1398_v30 }
 0x2b2   :  { %v1401_v35 = vrot.slane %v1400_v34, 1  ;;  %1774 = vmatpush3.bf16.msra.mxu0 %v1898_v31 }
 0x2b3   :  { %1775 = vmatprep.subr.bf16.mxu0 %v2080_v11 }
 0x2b4   :  { %v1402_v42 = vadd.f32 %v1401_v35, %v1400_v34 }
 0x2b6   :  { %v1926_v43 = vpop.eup %1925  ;;  %v1403_v44 = vmul.f32 0.125, %v1402_v42  ;;  %1776 = vmatpush3.bf16.msra.mxu0 %v1899_v56 }
 0x2b7   :  { %v1092_v45 = vmul.f32 %v1926_v43, %v1072_v39  ;;  %1777 = vmatprep.subr.bf16.mxu0 %v2080_v11 }
 0x2b8   :  { %v1404_v46 = vsub.f32 %v2276_v27, %v1403_v44 }
 0x2b9   :  { %v1093_v48 = vmul.f32 %v1092_v45, %v1080_v5  ;;  %v1099_v49 = vrot.slane %v1092_v45, %v2233_v61 }
 0x2ba   :  { %v1405_v50 = vmul.f32 %v1404_v46, %v1404_v46  ;;  %1778 = vmatpush3.bf16.msra.mxu0 %v1900_v40 }
 0x2bb   :  { %1779 = vmatprep.subr.bf16.mxu0 %v2080_v11  ;;  %v1094_v52 = vsub.f32 %v1073_v47, %v1093_v48  ;;  %v1101_v55 = vmul.f32 %v2266_v54, %v1099_v49  ;;  %v1904_v54 = vld [vmem:[#allocation8 + $0x88] sm:$0xff]  }
 0x2bc   :  { %v1406_v53 = vrot.slane %v1405_v50, 4 }
 0x2bd   :  { %v1106_v57 = vrot.slane %v1094_v52, %v2233_v61 }
 0x2be   :  { %v1407_v58 = vadd.f32 %v1406_v53, %v1405_v50  ;;  %1780 = vmatpush3.bf16.msra.mxu0 %v1901_v51 }
 0x2bf   :  { %1781 = vmatprep.subr.bf16.mxu0 %v2080_v11  ;;  %v1108_v62 = vadd.f32 %v1106_v57, %v1101_v55 }
 0x2c0   :  { %v1408_v63 = vrot.slane %v1407_v58, 2 }
 0x2c1   :  { %v1109_v0 = vmax.f32 %v1108_v62, 0.0 }
 0x2c2   :  { %v1409_v1 = vadd.f32 %v1408_v63, %v1407_v58  ;;  %1782 = vmatpush3.bf16.msra.mxu0 %v1902_v59 }
 0x2c3   :  { %v1111_v3 = vpack.c.bf16 %v1109_v0, %v1109_v0  ;;  %1787 = vmatprep.subr.bf16.mxu0 %v2080_v11 }
 0x2c4   :  { %v1410_v4 = vrot.slane %v1409_v1, 1 }
 0x2c5   :  { %1784 = vmatmul.mubr.bf16.vlgmr.msra.gmra.mrb[12].mxu0 %v1111_v3 }
 0x2c6   :  { %v1411_v5 = vadd.f32 %v1410_v4, %v1409_v1  ;;  %1788 = vmatpush3.bf16.msra.mxu0 %v1903_v2  ;;  %1803 = vmatprep.mubr.msk.bf16.mxu0 %vm2081_vm1, %v2080_v11 }
 0x2c7   :  { %1789 = vmatprep.subr.bf16.mxu0 %v2080_v11 }
 0x2c8   :  { %v1412_v6 = vmul.f32 0.125, %v1411_v5 }
 0x2ca   :  { %v1413_v7 = vadd.f32 1e-05, %v1412_v6  ;;  %1790 = vmatpush3.bf16.msra.mxu0 %v1904_v54 }
 0x2cb   :  { %1791 = vmatprep.subr.bf16.mxu0 %v2080_v11 }
 0x2cc   :  { %1927 = vrsqrt.f32 %v1413_v7 }
 0x2ce   :  { %1792 = vmatpush3.bf16.msra.mxu0 %v1905_v10 }
 0x2cf   :  { %1793 = vmatprep.subr.bf16.mxu0 %v2080_v11 }
 0x2d2   :  { %1794 = vmatpush3.bf16.msra.mxu0 %v1906_v13 }
 0x2d3   :  { %1795 = vmatprep.subr.bf16.mxu0 %v2080_v11 }
 0x2d6   :  { %v1928_v16 = vpop.eup %1927  ;;  %1796 = vmatpush3.bf16.msra.mxu0 %v1907_v14 }
 0x2d7   :  { %v1415_v18 = vmul.f32 %v1928_v16, %v1395_v15  ;;  %1797 = vmatprep.subr.bf16.mxu0 %v2080_v11 }
 0x2d9   :  { %v1416_v20 = vmul.f32 %v1415_v18, %v1403_v44  ;;  %v1422_v21 = vrot.slane %v1415_v18, %v2233_v61 }
 0x2da   :  { %1798 = vmatpush3.bf16.msra.mxu0 %v1908_v17 }
 0x2db   :  { %1799 = vmatprep.subr.bf16.mxu0 %v2080_v11  ;;  %v1417_v38 = vsub.f32 %v1396_v19, %v1416_v20  ;;  %v1424_v41 = vmul.f32 %v2276_v27, %v1422_v21 }
 0x2dd   :  { %v1429_v23 = vrot.slane %v1417_v38, %v2233_v61 }
 0x2de   :  { %1800 = vmatpush3.bf16.msra.mxu0 %v1909_v22 }
 0x2df   :  { %1801 = vmatprep.subr.bf16.mxu0 %v2080_v11  ;;  %v1431_v8 = vadd.f32 %v1429_v23, %v1424_v41  ;;  %v1645_v11 = vld [vmem:[#allocation10 + $0x14] ss:$0 sm:$0xff] }
 0x2e1   :  { %v1432_v24 = vmax.f32 %v1431_v8, 0.0 }
 0x2e2   :  { %1802 = vmatpush3.bf16.msra.mxu0 %v1910_v60 }
 0x2e3   :  { %v1434_v25 = vpack.c.bf16 %v1432_v24, %v1432_v24 }
 0x2e5   :  { %1804 = vmatmul.mubr.bf16.vlgmr.msra.gmra.mrb[16].mxu0 %v1434_v25 }
 0x378   :  { %v894_v26 = vpop.f32.mrb[8].mxu0 }
 0x379   :  { %v895_v12 = vadd.f32 %v1595_v9, %v894_v26  ;;  %v1765_v36 = vpop.f32.mrb[9].mxu0 }
 0x37a   :  { %v897_v28 = vpop.f32.mrb[10].mxu0 }
 0x37b   :  { %900 = vst [vmem:[#allocation11] sm:$0xff] %v895_v12  ;;  %v1766_v32 = vpop.f32.mrb[11].mxu0 }
 0x398   :  { %v1217_v27 = vpop.f32.mrb[12].mxu0 }
 0x399   :  { %v1218_v37 = vadd.f32 %v1620_v29, %v1217_v27  ;;  %v1785_v61 = vpop.f32.mrb[13].mxu0 }
 0x39a   :  { %v1220_v30 = vpop.f32.mrb[14].mxu0 }
 0x39b   :  { %1223 = vst [vmem:[#allocation11 + $0x8] sm:$0xff] %v1218_v37  ;;  %v1786_v33 = vpop.f32.mrb[15].mxu0 }
 0x3b8   :  { %v1540_v31 = vpop.f32.mrb[16].mxu0 }
 0x3b9   :  { %v1541_v34 = vadd.f32 %v1645_v11, %v1540_v31  ;;  %v1805_v35 = vpop.f32.mrb[17].mxu0 }
 0x3ba   :  { %v1543_v56 = vpop.f32.mrb[18].mxu0 }
 0x3bb   :  { %1546 = vst [vmem:[#allocation11 + $0x10] sm:$0xff] %v1541_v34  ;;  %v1806_v39 = vpop.f32.mrb[19].mxu0 }
 0x3bc   :  { %2050 = shalt.err (!%p2047_p2)
}
 0x3bd   :  { %s2051_s6 = scalar_lea.hbm %s2320_s5, 384 }
 0x3be   :  { %p2052_p3 = scmp.ne.s32.totalorder %s2320_s5, %s2051_s6  ;;  %p2055_p4 = scmp.lt.u32.totalorder %s2051_s6, %s2320_s5 }
 0x3c0   :  { %p2057_p5 = pnand %p2055_p4, %p2052_p3 }
 0x3c2   :  { %2060 = shalt.err (!%p2057_p5)
}
 0x3c3   :  { %1556 = dma.vmem_to_hbm [thread:$0]  %s1554_s19, 384, %s2320_s5, [#allocation4]  }
 0x3c4   :  { %2067 = dma.done.wait [#allocation4], 384  }
 0x3c5   :  { %2068 = vsyncadd [#allocation4], 4294966912 }
 0x3c6   :  { %1560 = vsyncpa [#allocation3], 1 }
 0x3c7   :  { %1561 = vsyncpa [#allocation6], 1 }
 0x3c8   :  { %1562 = vsyncpa [#allocation9], 1 }
 0x3c9   :  { %1563 = vsyncpa [#allocation4], 1 }

</bundles_post_ra>
